<compile_context>
chip_gen: v7x
topology: tpu7x:2x2x1
jax: 0.10.0
libtpu: 0.0.40
codegen_flags: <defaults>
</compile_context>

<pallas_src>
import jax
import jax.numpy as jnp
from jax import lax
from jax.experimental import pallas as pl
from jax.experimental.pallas import tpu as pltpu

_EPS = 1e-5


def _round_up(n, m):
    return ((n + m - 1) // m) * m


# --------------------------------------------------------------------------
# Kernel
# --------------------------------------------------------------------------
def _mlp_kernel(x_ref,
                w1_ref, b1_ref,
                w2_ref, b2_ref,
                w3_ref, b3_ref,
                w4_ref, b4_ref,
                out_ref):
    # Layer 1: Linear(pad(input_dim) -> 256) + ReLU.  BN1 is folded into W2/b2.
    h = jnp.dot(x_ref[...], w1_ref[...], preferred_element_type=jnp.float32)
    h = jnp.maximum(h + b1_ref[...], 0.0)

    # Layer 2: Linear(256 -> 128) + ReLU.  BN2 folded into W3/b3.
    h = jnp.dot(h.astype(jnp.bfloat16), w2_ref[...],
                preferred_element_type=jnp.float32)
    h = jnp.maximum(h + b2_ref[...], 0.0)

    # Layer 3: Linear(128 -> 64, zero-padded to 128) + ReLU.  BN3 folded into W4/b4.
    # Padded output columns are exactly 0 after ReLU (zero weights, zero bias).
    h = jnp.dot(h.astype(jnp.bfloat16), w3_ref[...],
                preferred_element_type=jnp.float32)
    h = jnp.maximum(h + b3_ref[...], 0.0)

    # Layer 4: Linear(64 -> 1) computed as a trans-B dot so the result is a
    # lane-dense (1, TILE_B) row instead of a masked-store (TILE_B, 1) column:
    #   y[0, b] = sum_k w4[0, k] * h[b, k]
    y = lax.dot_general(w4_ref[...], h,
                        dimension_numbers=(((1,), (1,)), ((), ())),
                        preferred_element_type=jnp.float32)
    out_ref[...] = y + b4_ref[0]          # scalar output bias from SMEM


# --------------------------------------------------------------------------
# Wrapper
# --------------------------------------------------------------------------
def nba_predictor_forward(x, kparams, *, tile_b=None):
    """x: (B, input_dim) f32.  kparams: output of fold_and_pad()."""
    w1, b1, w2, b2, w3, b3, w4row, b4 = kparams
    B, d_in = x.shape
    d_pad = w1.shape[0]                   # input dim padded to a multiple of 128

    if tile_b is None:
        # Per-row live activations ~ (128 + 256 + 128 + 128) * 4 B ≈ 2.6 KiB,
        # weights < 0.5 MiB total.  TILE_B=512 keeps the working set far below
        # the 32 MiB scoped-VMEM default on every generation (v7x included);
        # on v6e one can pass tile_b=2048..4096 to amortize per-step overhead.
        tile_b = min(512, _round_up(max(B, 1), 128))

    b_pad = _round_up(max(B, 1), tile_b)

    # Zero-pad batch to a tile multiple and features to the padded lane width,
    # casting to bf16 for the MXU (f32 accumulation inside the kernel).
    xp = jnp.zeros((b_pad, d_pad), jnp.bfloat16)
    xp = xp.at[:B, :d_in].set(x.astype(jnp.bfloat16))

    grid = (b_pad // tile_b,)

    in_specs = [
        pl.BlockSpec((tile_b, d_pad), lambda i: (i, 0)),          # x tile
        pl.BlockSpec((d_pad, 256), lambda i: (0, 0)),             # W1 (resident)
        pl.BlockSpec((1, 256), lambda i: (0, 0)),                 # b1
        pl.BlockSpec((256, 128), lambda i: (0, 0)),               # W2 (BN1 folded)
        pl.BlockSpec((1, 128), lambda i: (0, 0)),                 # b2
        pl.BlockSpec((128, 128), lambda i: (0, 0)),               # W3 (BN2 folded, padded)
        pl.BlockSpec((1, 128), lambda i: (0, 0)),                 # b3
        pl.BlockSpec((1, 128), lambda i: (0, 0)),                 # W4 row (BN3 folded, padded)
        pl.BlockSpec(memory_space=pltpu.MemorySpace.SMEM),        # b4 scalar
    ]

    out_row = pl.pallas_call(
        _mlp_kernel,
        grid_spec=pltpu.PrefetchScalarGridSpec(
            num_scalar_prefetch=0,
            grid=grid,
            in_specs=in_specs,
            out_specs=pl.BlockSpec((1, tile_b), lambda i: (0, i)),
        ),
        out_shape=jax.ShapeDtypeStruct((1, b_pad), jnp.float32),
        compiler_params=pltpu.CompilerParams(
            dimension_semantics=("parallel",)),
    )(xp, w1, b1, w2, b2, w3, b3, w4row, b4)

    # Lane-dense (1, B_pad) row -> (B, 1) column, dropping padded rows.
    return out_row[0, :B].reshape(B, 1)


# --------------------------------------------------------------------------
# Parameters: PyTorch-like raw init, then BN folding + padding at init time.
# --------------------------------------------------------------------------
def init_raw_params(key, input_dim):
    """Deterministic synthetic parameters matching NBAPredictor.__init__ shapes."""
    dims = [(input_dim, 256), (256, 128), (128, 64), (64, 1)]
    keys = jax.random.split(key, 24)
    ki = iter(keys)
    layers = []
    for li, (din, dout) in enumerate(dims):
        bound = 1.0 / (din ** 0.5)
        layer = {
            "w": jax.random.uniform(next(ki), (din, dout), jnp.float32, -bound, bound),
            "b": jax.random.uniform(next(ki), (dout,), jnp.float32, -bound, bound),
        }
        if li < 3:  # BatchNorm1d after the first three Linear layers
            layer["gamma"] = 1.0 + 0.1 * jax.random.normal(next(ki), (dout,), jnp.float32)
            layer["beta"] = 0.1 * jax.random.normal(next(ki), (dout,), jnp.float32)
            layer["mean"] = 0.1 * jax.random.normal(next(ki), (dout,), jnp.float32)
            layer["var"] = jax.random.uniform(next(ki), (dout,), jnp.float32, 0.5, 1.5)
        layers.append(layer)
    return layers


def fold_and_pad(raw, eps=_EPS):
    """Fold eval-mode BN into the following Linear and pad dims to lane width."""
    scales, shifts = [], []
    for layer in raw[:3]:
        s = layer["gamma"] / jnp.sqrt(layer["var"] + eps)
        t = layer["beta"] - layer["mean"] * s
        scales.append(s)
        shifts.append(t)

    w1, b1 = raw[0]["w"], raw[0]["b"]
    w2 = scales[0][:, None] * raw[1]["w"]
    b2 = raw[1]["b"] + shifts[0] @ raw[1]["w"]
    w3 = scales[1][:, None] * raw[2]["w"]
    b3 = raw[2]["b"] + shifts[1] @ raw[2]["w"]
    w4 = scales[2][:, None] * raw[3]["w"]          # (64, 1)
    b4 = raw[3]["b"] + shifts[2] @ raw[3]["w"]     # (1,)

    # Pad input dim -> multiple of 128 (zero rows of W1).
    d_in = w1.shape[0]
    d_in_pad = _round_up(d_in, 128)
    w1p = jnp.zeros((d_in_pad, 256), jnp.float32).at[:d_in, :].set(w1)

    # Pad layer-3 output 64 -> 128 (zero cols / zero bias / zero W4 rows).
    w3p = jnp.zeros((128, 128), jnp.float32).at[:, :w3.shape[1]].set(w3)
    b3p = jnp.zeros((128,), jnp.float32).at[:b3.shape[0]].set(b3)
    w4row = jnp.zeros((1, 128), jnp.float32).at[0, :w4.shape[0]].set(w4[:, 0])

    return (
        w1p.astype(jnp.bfloat16), b1.reshape(1, -1).astype(jnp.float32),
        w2.astype(jnp.bfloat16), b2.reshape(1, -1).astype(jnp.float32),
        w3p.astype(jnp.bfloat16), b3p.reshape(1, -1).astype(jnp.float32),
        w4row.astype(jnp.float32), b4.reshape(1,).astype(jnp.float32),
    )


def reference_forward(x, raw, eps=_EPS):
    """Pure-JAX f32 reference with the original (unfolded) op sequence."""
    h = x
    for li, layer in enumerate(raw):
        h = h @ layer["w"] + layer["b"]
        if li < 3:
            h = jnp.maximum(h, 0.0)
            s = layer["gamma"] / jnp.sqrt(layer["var"] + eps)
            t = layer["beta"] - layer["mean"] * s
            h = h * s + t
            # Dropout: identity in eval mode.
    return h


if __name__ == "__main__":
    key = jax.random.PRNGKey(0)
    k_x, k_p = jax.random.split(key)

    batch = 8
    input_dim = 32
    x = jax.random.normal(k_x, (batch, input_dim), jnp.float32)

    raw_params = init_raw_params(k_p, input_dim)
    kparams = fold_and_pad(raw_params)

    out = nba_predictor_forward(x, kparams)
    out = jax.block_until_ready(out)

    assert out.shape == (batch, 1), out.shape
    assert out.dtype == jnp.float32
    assert bool(jnp.all(jnp.isfinite(out)))

    # Loose tolerance: kernel uses bf16 MXU inputs (f32 accumulation) vs. f32 ref.
    ref = reference_forward(x, raw_params)
    assert bool(jnp.allclose(out, ref, rtol=0.1, atol=0.2)), (out, ref)

    print("KERNEL_OK")
</pallas_src>

<mosaic_0001>
module attributes {stable_mosaic.version = 11 : i64} {
  func.func @_mlp_kernel(%arg0: i32, %arg1: memref<128x128xbf16, #tpu.memory_space<vmem>>, %arg2: memref<128x256xbf16, #tpu.memory_space<vmem>>, %arg3: memref<1x256xf32, #tpu.memory_space<vmem>>, %arg4: memref<256x128xbf16, #tpu.memory_space<vmem>>, %arg5: memref<1x128xf32, #tpu.memory_space<vmem>>, %arg6: memref<128x128xbf16, #tpu.memory_space<vmem>>, %arg7: memref<1x128xf32, #tpu.memory_space<vmem>>, %arg8: memref<1x128xf32, #tpu.memory_space<vmem>>, %arg9: memref<1xf32, #tpu.memory_space<smem>>, %arg10: memref<1x128xf32, #tpu.memory_space<vmem>>) attributes {dimension_semantics = [#tpu.dimension_semantics<parallel>], iteration_bounds = array<i64: 1>, scalar_prefetch = 0 : i64, scratch_operands = 0 : i64, tpu.core_type = #tpu.core_type<tc>, window_params = [{transform_indices = @transform_0, window_bounds = array<i64: 128, 128>}, {pipeline_mode = #tpu.pipeline_mode<synchronous>, transform_indices = @transform_1, window_bounds = array<i64: 128, 256>}, {pipeline_mode = #tpu.pipeline_mode<synchronous>, transform_indices = @transform_2, window_bounds = array<i64: 1, 256>}, {pipeline_mode = #tpu.pipeline_mode<synchronous>, transform_indices = @transform_3, window_bounds = array<i64: 256, 128>}, {pipeline_mode = #tpu.pipeline_mode<synchronous>, transform_indices = @transform_4, window_bounds = array<i64: 1, 128>}, {pipeline_mode = #tpu.pipeline_mode<synchronous>, transform_indices = @transform_5, window_bounds = array<i64: 128, 128>}, {pipeline_mode = #tpu.pipeline_mode<synchronous>, transform_indices = @transform_6, window_bounds = array<i64: 1, 128>}, {pipeline_mode = #tpu.pipeline_mode<synchronous>, transform_indices = @transform_7, window_bounds = array<i64: 1, 128>}, {transform_indices = @transform_8, window_bounds = array<i64: 1>}, {transform_indices = @transform_9, window_bounds = array<i64: 1, 128>}]} {
    %c0 = arith.constant 0 : index
    %c0_0 = arith.constant 0 : index
    %0 = vector.load %arg1[%c0, %c0_0] : memref<128x128xbf16, #tpu.memory_space<vmem>>, vector<128x128xbf16>
    %c0_1 = arith.constant 0 : index
    %c0_2 = arith.constant 0 : index
    %1 = vector.load %arg2[%c0_1, %c0_2] : memref<128x256xbf16, #tpu.memory_space<vmem>>, vector<128x256xbf16>
    %cst = arith.constant dense<0.000000e+00> : vector<128x256xf32>
    %2 = tpu.matmul %0, %1, %cst {dimension_numbers = #tpu.dot_dimension_numbers<[1], [0], [0], [1], [0, 0, 1, 1], [], []>} : vector<128x128xbf16>, vector<128x256xbf16>, vector<128x256xf32> -> vector<128x256xf32>
    %c0_3 = arith.constant 0 : index
    %c0_4 = arith.constant 0 : index
    %3 = vector.load %arg3[%c0_3, %c0_4] : memref<1x256xf32, #tpu.memory_space<vmem>>, vector<1x256xf32>
    %4 = vector.broadcast %3 : vector<1x256xf32> to vector<128x256xf32>
    %5 = arith.addf %2, %4 : vector<128x256xf32>
    %cst_5 = arith.constant 0.000000e+00 : f32
    %6 = vector.broadcast %cst_5 : f32 to vector<128x256xf32>
    %7 = arith.maximumf %5, %6 : vector<128x256xf32>
    %8 = arith.truncf %7 : vector<128x256xf32> to vector<128x256xbf16>
    %c0_6 = arith.constant 0 : index
    %c0_7 = arith.constant 0 : index
    %9 = vector.load %arg4[%c0_6, %c0_7] : memref<256x128xbf16, #tpu.memory_space<vmem>>, vector<256x128xbf16>
    %cst_8 = arith.constant dense<0.000000e+00> : vector<128x128xf32>
    %10 = tpu.matmul %8, %9, %cst_8 {dimension_numbers = #tpu.dot_dimension_numbers<[1], [0], [0], [1], [0, 0, 1, 1], [], []>} : vector<128x256xbf16>, vector<256x128xbf16>, vector<128x128xf32> -> vector<128x128xf32>
    %c0_9 = arith.constant 0 : index
    %c0_10 = arith.constant 0 : index
    %11 = vector.load %arg5[%c0_9, %c0_10] : memref<1x128xf32, #tpu.memory_space<vmem>>, vector<1x128xf32>
    %12 = vector.broadcast %11 : vector<1x128xf32> to vector<128x128xf32>
    %13 = arith.addf %10, %12 : vector<128x128xf32>
    %cst_11 = arith.constant 0.000000e+00 : f32
    %14 = vector.broadcast %cst_11 : f32 to vector<128x128xf32>
    %15 = arith.maximumf %13, %14 : vector<128x128xf32>
    %16 = arith.truncf %15 : vector<128x128xf32> to vector<128x128xbf16>
    %c0_12 = arith.constant 0 : index
    %c0_13 = arith.constant 0 : index
    %17 = vector.load %arg6[%c0_12, %c0_13] : memref<128x128xbf16, #tpu.memory_space<vmem>>, vector<128x128xbf16>
    %cst_14 = arith.constant dense<0.000000e+00> : vector<128x128xf32>
    %18 = tpu.matmul %16, %17, %cst_14 {dimension_numbers = #tpu.dot_dimension_numbers<[1], [0], [0], [1], [0, 0, 1, 1], [], []>} : vector<128x128xbf16>, vector<128x128xbf16>, vector<128x128xf32> -> vector<128x128xf32>
    %c0_15 = arith.constant 0 : index
    %c0_16 = arith.constant 0 : index
    %19 = vector.load %arg7[%c0_15, %c0_16] : memref<1x128xf32, #tpu.memory_space<vmem>>, vector<1x128xf32>
    %20 = vector.broadcast %19 : vector<1x128xf32> to vector<128x128xf32>
    %21 = arith.addf %18, %20 : vector<128x128xf32>
    %cst_17 = arith.constant 0.000000e+00 : f32
    %22 = vector.broadcast %cst_17 : f32 to vector<128x128xf32>
    %23 = arith.maximumf %21, %22 : vector<128x128xf32>
    %c0_18 = arith.constant 0 : index
    %c0_19 = arith.constant 0 : index
    %24 = vector.load %arg8[%c0_18, %c0_19] : memref<1x128xf32, #tpu.memory_space<vmem>>, vector<1x128xf32>
    %cst_20 = arith.constant dense<0.000000e+00> : vector<1x128xf32>
    %25 = tpu.matmul %24, %23, %cst_20 {dimension_numbers = #tpu.dot_dimension_numbers<[1], [1], [0], [0], [0, 0, 1, 0], [], []>} : vector<1x128xf32>, vector<128x128xf32>, vector<1x128xf32> -> vector<1x128xf32>
    %c0_21 = arith.constant 0 : index
    %26 = memref.load %arg9[%c0_21] : memref<1xf32, #tpu.memory_space<smem>>
    %27 = vector.broadcast %26 : f32 to vector<1x128xf32>
    %28 = arith.addf %25, %27 : vector<1x128xf32>
    %c0_22 = arith.constant 0 : index
    %c0_23 = arith.constant 0 : index
    %29 = vector.load %arg10[%c0_22, %c0_23] : memref<1x128xf32, #tpu.memory_space<vmem>>, vector<1x128xf32>
    tpu.vector_store %arg10[%c0_22, %c0_23], %28 {strides = array<i32>} : memref<1x128xf32, #tpu.memory_space<vmem>>, vector<1x128xf32>,
    return
  }
  func.func @transform_0(%arg0: i32) -> (i32, i32) {
    %c0_i32 = arith.constant 0 : i32
    %c0_i32_0 = arith.constant 0 : i32
    return %arg0, %c0_i32 : i32, i32
  }
  func.func @transform_1(%arg0: i32) -> (i32, i32) {
    %c0_i32 = arith.constant 0 : i32
    %c0_i32_0 = arith.constant 0 : i32
    %c0_i32_1 = arith.constant 0 : i32
    return %c0_i32, %c0_i32_0 : i32, i32
  }
  func.func @transform_2(%arg0: i32) -> (i32, i32) {
    %c0_i32 = arith.constant 0 : i32
    %c0_i32_0 = arith.constant 0 : i32
    %c0_i32_1 = arith.constant 0 : i32
    return %c0_i32, %c0_i32_0 : i32, i32
  }
  func.func @transform_3(%arg0: i32) -> (i32, i32) {
    %c0_i32 = arith.constant 0 : i32
    %c0_i32_0 = arith.constant 0 : i32
    %c0_i32_1 = arith.constant 0 : i32
    return %c0_i32, %c0_i32_0 : i32, i32
  }
  func.func @transform_4(%arg0: i32) -> (i32, i32) {
    %c0_i32 = arith.constant 0 : i32
    %c0_i32_0 = arith.constant 0 : i32
    %c0_i32_1 = arith.constant 0 : i32
    return %c0_i32, %c0_i32_0 : i32, i32
  }
  func.func @transform_5(%arg0: i32) -> (i32, i32) {
    %c0_i32 = arith.constant 0 : i32
    %c0_i32_0 = arith.constant 0 : i32
    %c0_i32_1 = arith.constant 0 : i32
    return %c0_i32, %c0_i32_0 : i32, i32
  }
  func.func @transform_6(%arg0: i32) -> (i32, i32) {
    %c0_i32 = arith.constant 0 : i32
    %c0_i32_0 = arith.constant 0 : i32
    %c0_i32_1 = arith.constant 0 : i32
    return %c0_i32, %c0_i32_0 : i32, i32
  }
  func.func @transform_7(%arg0: i32) -> (i32, i32) {
    %c0_i32 = arith.constant 0 : i32
    %c0_i32_0 = arith.constant 0 : i32
    %c0_i32_1 = arith.constant 0 : i32
    return %c0_i32, %c0_i32_0 : i32, i32
  }
  func.func @transform_8(%arg0: i32) -> i32 {
    %c0_i32 = arith.constant 0 : i32
    %c0_i32_0 = arith.constant 0 : i32
    return %c0_i32 : i32
  }
  func.func @transform_9(%arg0: i32) -> (i32, i32) {
    %c0_i32 = arith.constant 0 : i32
    %c0_i32_0 = arith.constant 0 : i32
    return %c0_i32, %arg0 : i32, i32
  }
}

</mosaic_0001>

<bundles_post_ra>
// kernel: tpu_custom_call.1
= control target key start
LH: loop header
LB: loop body
LE: loop exit
PB: predicated region body
PF: predicated region fallthrough
CT: control target
= control target key end

     0   :  { %15 = vsyncpa [#allocation4], 0  ;;  %s1603_s0 = inlined_call_operand.hbm [shape: bf16[128,128], index: 0, kind: input, shape index: {}]   ;;  %s1604_s1 = inlined_call_operand.hbm [shape: bf16[128,256], index: 1, kind: input, shape index: {}]   ;;  %s1605_s2 = inlined_call_operand.vmem [shape: f32[1,256], index: 2, kind: input, shape index: {}]   ;;  %s1606_s3 = inlined_call_operand.hbm [shape: bf16[256,128], index: 3, kind: input, shape index: {}]   ;;  %s1607_s4 = inlined_call_operand.vmem [shape: f32[1,128], index: 4, kind: input, shape index: {}]   ;;  %s1608_s5 = inlined_call_operand.hbm [shape: bf16[128,128], index: 5, kind: input, shape index: {}]   ;;  %s1609_s6 = inlined_call_operand.vmem [shape: f32[1,128], index: 6, kind: input, shape index: {}]   ;;  %s1610_s7 = inlined_call_operand.vmem [shape: f32[1,128], index: 7, kind: input, shape index: {}]   ;;  %s1611_s8 = inlined_call_operand.<no memory space> [shape: f32[1], index: 8, kind: input, shape index: {}]   ;;  %s1612_s9 = inlined_call_operand.hbm [shape: f32[1,128], index: 9, kind: output, shape index: {}]  }
   0x1   :  { %16 = vsyncpa [#allocation7], 0 }
   0x2   :  { %17 = vsyncpa [#allocation10], 0 }
   0x3   :  { %18 = vsyncpa [#allocation5], 0  ;;  %s1379_s30 = smov [#allocation6]   ;;  %s1261_s13 = scalar_lea.hbm %s1604_s1, 2048 }
   0x4   :  { %s36_s10 = sshll.u32 %s1379_s30, 4  ;;  %p1262_p0 = scmp.ne.s32.totalorder %s1604_s1, %s1261_s13  ;;  %s37_s10 = int_to_ptr.vmem [resolvable:$true] %s36_s10 }
   0x5   :  { %p1265_p1 = scmp.lt.u32.totalorder %s1261_s13, %s1604_s1 }
   0x7   :  { %p1267_p2 = pnand %p1265_p1, %p1262_p0 }
   0x9   :  { %1270 = shalt.err (!%p1267_p2)
}
   0xa   :  { %s1271_s18 = scalar_lea.vmem %s37_s10, 2048  ;;  %p1276_p4 = scmp.lt.s32.totalorder %s37_s10, %s37_s10 }
   0xb   :  { %p1272_p3 = scmp.ne.s32.totalorder %s37_s10, %s1271_s18  ;;  %p1277_p5 = scmp.lt.s32.totalorder %s1271_s18, %s1271_s18 }
   0xd   :  { %p1278_p6 = por %p1277_p5, %p1276_p4 }
   0xf   :  { %p1279_p7 = pnand %p1278_p6, %p1272_p3 }
  0x11   :  { %1282 = shalt.err (!%p1279_p7)
}
  0x12   :  { %s1380_s19 = smov 128   ;;  %s1381_s20 = smov 8  }
  0x13   :  { %42 = dma.hbm_to_vmem [thread:$0]  %s1604_s1, 2048, %s37_s10, [#allocation7], %s1380_s19, %s1380_s19, %s1381_s20  }
  0x14   :  { %s1382_s23 = smov [#allocation3]   ;;  %s1283_s27 = scalar_lea.hbm %s1603_s0, 1024 }
  0x15   :  { %s24_s24 = sshll.u32 %s1382_s23, 4  ;;  %p1284_p8 = scmp.ne.s32.totalorder %s1603_s0, %s1283_s27  ;;  %s25_s24 = int_to_ptr.vmem [resolvable:$true] %s24_s24 }
  0x16   :  { %p1287_p9 = scmp.lt.u32.totalorder %s1283_s27, %s1603_s0 }
  0x18   :  { %p1289_p10 = pnand %p1287_p9, %p1284_p8 }
  0x1a   :  { %1292 = shalt.err (!%p1289_p10)
}
  0x1b   :  { %s1293_s12 = scalar_lea.vmem %s25_s24, 1024  ;;  %p1298_p12 = scmp.lt.s32.totalorder %s25_s24, %s25_s24 }
  0x1c   :  { %p1294_p11 = scmp.ne.s32.totalorder %s25_s24, %s1293_s12  ;;  %p1299_p13 = scmp.lt.s32.totalorder %s1293_s12, %s1293_s12 }
  0x1e   :  { %p1300_p0 = por %p1299_p13, %p1298_p12 }
  0x20   :  { %p1301_p1 = pnand %p1300_p0, %p1294_p11 }
  0x22   :  { %1304 = shalt.err (!%p1301_p1)
}
  0x23   :  { %s1383_s1 = smov 64   ;;  %s1384_s10 = smov 4  }
  0x24   :  { %30 = dma.hbm_to_vmem [thread:$0]  %s1603_s0, 1024, %s25_s24, [#allocation4], %s1383_s1, %s1383_s1, %s1384_s10  }
  0x25   :  { %s1385_s15 = smov [#allocation8]   ;;  %s1386_s17 = smov [#allocation9]  }
  0x26   :  { %s50_s16 = sshll.u32 %s1385_s15, 4  ;;  %s64_s18 = sshll.u32 %s1386_s17, 4  ;;  %s51_s16 = int_to_ptr.vmem [resolvable:$true] %s50_s16  ;;  %s1469_s18 = int_to_ptr.vmem [resolvable:$true] %s64_s18 }
  0x27   :  { %s1305_s21 = scalar_lea.hbm %s1606_s3, 2048 }
  0x28   :  { %p1306_p2 = scmp.ne.s32.totalorder %s1606_s3, %s1305_s21  ;;  %p1309_p3 = scmp.lt.u32.totalorder %s1305_s21, %s1606_s3 }
  0x2a   :  { %p1311_p4 = pnand %p1309_p3, %p1306_p2 }
  0x2c   :  { %1314 = shalt.err (!%p1311_p4)
}
  0x2d   :  { %s1315_s0 = scalar_lea.vmem %s51_s16, 2048  ;;  %p1320_p6 = scmp.lt.s32.totalorder %s51_s16, %s51_s16 }
  0x2e   :  { %p1316_p5 = scmp.ne.s32.totalorder %s51_s16, %s1315_s0  ;;  %p1321_p7 = scmp.lt.s32.totalorder %s1315_s0, %s1315_s0 }
  0x30   :  { %p1322_p8 = por %p1321_p7, %p1320_p6 }
  0x32   :  { %p1323_p9 = pnand %p1322_p8, %p1316_p5 }
  0x34   :  { %1326 = shalt.err (!%p1323_p9)
}
  0x35   :  { %56 = dma.hbm_to_vmem [thread:$0]  %s1606_s3, 2048, %s51_s16, [#allocation7], %s1383_s1, %s1383_s1, %s1384_s10  }
  0x36   :  { %s1327_s30 = scalar_lea.hbm %s1608_s5, 1024 }
  0x37   :  { %p1328_p10 = scmp.ne.s32.totalorder %s1608_s5, %s1327_s30  ;;  %p1331_p11 = scmp.lt.u32.totalorder %s1327_s30, %s1608_s5 }
  0x39   :  { %p1333_p12 = pnand %p1331_p11, %p1328_p10 }
  0x3b   :  { %1336 = shalt.err (!%p1333_p12)
}
  0x3c   :  { %s1337_s15 = scalar_lea.vmem %s1469_s18, 1024  ;;  %p1342_p0 = scmp.lt.s32.totalorder %s1469_s18, %s1469_s18 }
  0x3d   :  { %p1338_p13 = scmp.ne.s32.totalorder %s1469_s18, %s1337_s15  ;;  %p1343_p1 = scmp.lt.s32.totalorder %s1337_s15, %s1337_s15 }
  0x3f   :  { %p1344_p2 = por %p1343_p1, %p1342_p0 }
  0x41   :  { %p1345_p3 = pnand %p1344_p2, %p1338_p13 }
  0x43   :  { %1348 = shalt.err (!%p1345_p3)
}
  0x44   :  { %70 = dma.hbm_to_vmem [thread:$0]  %s1608_s5, 1024, %s1469_s18, [#allocation10], %s1383_s1, %s1383_s1, %s1384_s10  }
  0x45   :  { %1371 = dma.done.wait [#allocation4], 1024  }
  0x46   :  { %1372 = vsyncadd [#allocation4], 4294966272 }
  0x47   :  { %1373 = dma.done.wait [#allocation7], 4096  }
  0x48   :  { %1374 = vsyncadd [#allocation7], 4294963200 }
  0x49   :  { %1375 = dma.done.wait [#allocation10], 1024  }
  0x4a   :  { %1376 = vsyncadd [#allocation10], 4294966272  ;;  %v1387_v0 = vmov 0   ;;  %v1205_v1 = vld [vmem:[#allocation6 + $0x4] ss:$8 sps:$4 sm:$0xff]   ;;  %v1241_v19 = vld [vmem:[#allocation8 + $0x50] sm:$0xff]   ;;  %v124_v47 = vlaneseq }
  0x4b   :  { %294 = vmatprep.mubr.bf16.mxu0 %v1387_v0  ;;  %v1207_v2 = vld [vmem:[#allocation6] ss:$8 sps:$4 sm:$0xff]   ;;  %262 = vmatprep.subr.bf16.mxu0 %v1205_v1  ;;  %v1208_v3 = vld [vmem:[#allocation6 + $0x14] ss:$8 sps:$4 sm:$0xff]   ;;  %v1210_v4 = vld [vmem:[#allocation6 + $0x10] ss:$8 sps:$4 sm:$0xff]  }
  0x4c   :  { %263 = vmatpush1.bf16.msra.mxu0 %v1207_v2  ;;  %v1211_v5 = vld [vmem:[#allocation6 + $0x24] ss:$8 sps:$4 sm:$0xff]   ;;  %v1213_v6 = vld [vmem:[#allocation6 + $0x20] ss:$8 sps:$4 sm:$0xff]   ;;  %v1214_v7 = vld [vmem:[#allocation6 + $0x34] ss:$8 sps:$4 sm:$0xff]  }
  0x4d   :  { %264 = vmatprep.subr.bf16.mxu0 %v1208_v3  ;;  %v1216_v8 = vld [vmem:[#allocation6 + $0x30] ss:$8 sps:$4 sm:$0xff]   ;;  %v1217_v9 = vld [vmem:[#allocation6 + $0x44] ss:$8 sps:$4 sm:$0xff]   ;;  %v1219_v10 = vld [vmem:[#allocation6 + $0x40] ss:$8 sps:$4 sm:$0xff]  }
  0x4e   :  { %v1220_v11 = vld [vmem:[#allocation6 + $0x54] ss:$8 sps:$4 sm:$0xff]   ;;  %v1222_v12 = vld [vmem:[#allocation6 + $0x50] ss:$8 sps:$4 sm:$0xff]   ;;  %v1223_v13 = vld [vmem:[#allocation6 + $0x64] ss:$8 sps:$4 sm:$0xff]  }
  0x4f   :  { %v1237_v14 = vld [vmem:[#allocation8 + $0x40] sm:$0xff]   ;;  %v1239_v17 = vld [vmem:[#allocation8 + $0x48] sm:$0xff]   ;;  %v1226_v20 = vld [vmem:[#allocation6 + $0x74] ss:$8 sps:$4 sm:$0xff]   ;;  %v125_v48 = vshrl.u32 %v124_v47, 7  ;;  %vm1389_vm0 = vmmov 0  }
  0x50   :  { %265 = vmatpush1.bf16.msra.mxu0 %v1210_v4  ;;  %v1238_v15 = vld [vmem:[#allocation8] sm:$0xff]   ;;  %1004 = vmatprep.subr.bf16.mxu1 %v1237_v14  ;;  %v1240_v18 = vld [vmem:[#allocation8 + $0x8] sm:$0xff]   ;;  %v1228_v21 = vld [vmem:[#allocation6 + $0x70] ss:$8 sps:$4 sm:$0xff]   ;;  %s1391_s21 = smov [#allocation11]  }
  0x51   :  { %266 = vmatprep.subr.bf16.mxu0 %v1211_v5  ;;  %v1225_v16 = vld [vmem:[#allocation6 + $0x60] ss:$8 sps:$4 sm:$0xff]   ;;  %1005 = vmatpush3.bf16.msra.mxu1 %v1238_v15  ;;  %v1242_v22 = vld [vmem:[#allocation8 + $0x10] sm:$0xff]   ;;  %v1243_v23 = vld [vmem:[#allocation8 + $0x58] sm:$0xff]   ;;  %v126_v49 = vsub.s32 0, %v125_v48  ;;  %v130_v51 = vsub.s32 1, %v125_v48 }
  0x52   :  { %1006 = vmatprep.subr.bf16.mxu1 %v1239_v17  ;;  %v1229_v24 = vld [vmem:[#allocation3] sm:$0xff]   ;;  %v1244_v25 = vld [vmem:[#allocation8 + $0x18] sm:$0xff]   ;;  %v1247_v28 = vld [vmem:[#allocation8 + $0x68] sm:$0xff]   ;;  %s943_s22 = sshll.u32 %s1391_s21, 4  ;;  %s944_s22 = int_to_ptr.vmem [resolvable:$true] %s943_s22 }
  0x53   :  { %v1245_v26 = vld [vmem:[#allocation8 + $0x60] sm:$0xff]   ;;  %v1230_v29 = vld [vmem:[#allocation3 + $0x8] sm:$0xff]   ;;  %v1231_v30 = vld [vmem:[#allocation3 + $0x10] sm:$0xff]   ;;  %s1349_s23 = scalar_lea.vmem %s944_s22, 16  ;;  %s1353_s25 = scalar_lea.vmem %s944_s22, 32 }
  0x54   :  { %267 = vmatpush1.bf16.msra.mxu0 %v1213_v6  ;;  %v1246_v27 = vld [vmem:[#allocation8 + $0x20] sm:$0xff]   ;;  %v1232_v31 = vld [vmem:[#allocation3 + $0x18] sm:$0xff]   ;;  %v1234_v33 = vld [vmem:[#allocation3 + $0x28] sm:$0xff]   ;;  %p1350_p4 = scmp.ne.s32.totalorder %s944_s22, %s1349_s23  ;;  %p1354_p5 = scmp.lt.s32.totalorder %s944_s22, %s944_s22 }
  0x55   :  { %268 = vmatprep.subr.bf16.mxu0 %v1214_v7  ;;  %1007 = vmatpush3.bf16.msra.mxu1 %v1240_v18  ;;  %v1233_v32 = vld [vmem:[#allocation3 + $0x20] sm:$0xff]   ;;  %v1235_v34 = vld [vmem:[#allocation3 + $0x30] sm:$0xff]   ;;  %v1236_v35 = vld [vmem:[#allocation3 + $0x38] sm:$0xff]   ;;  %p1355_p6 = scmp.lt.s32.totalorder %s1353_s25, %s1349_s23 }
  0x56   :  { %1008 = vmatprep.subr.bf16.mxu1 %v1241_v19  ;;  %v1248_v36 = vld [vmem:[#allocation8 + $0x28] sm:$0xff]   ;;  %v1249_v37 = vld [vmem:[#allocation8 + $0x70] sm:$0xff]   ;;  %v1251_v39 = vld [vmem:[#allocation8 + $0x78] sm:$0xff]  }
  0x57   :  { %v1250_v38 = vld [vmem:[#allocation8 + $0x30] sm:$0xff]   ;;  %v1252_v40 = vld [vmem:[#allocation8 + $0x38] sm:$0xff]   ;;  %v1253_v41 = vld [vmem:[#allocation9] sm:$0xff]   ;;  %p1356_p7 = por %p1355_p6, %p1354_p5 }
  0x58   :  { %269 = vmatpush1.bf16.msra.mxu0 %v1216_v8  ;;  %v1254_v42 = vld [vmem:[#allocation9 + $0x8] sm:$0xff]   ;;  %v1255_v43 = vld [vmem:[#allocation9 + $0x10] sm:$0xff]   ;;  %v1256_v44 = vld [vmem:[#allocation9 + $0x18] sm:$0xff]  }
  0x59   :  { %270 = vmatprep.subr.bf16.mxu0 %v1217_v9  ;;  %1009 = vmatpush3.bf16.msra.mxu1 %v1242_v22  ;;  %v1257_v45 = vld [vmem:[#allocation9 + $0x20] sm:$0xff]   ;;  %v1258_v46 = vld [vmem:[#allocation9 + $0x28] sm:$0xff]   ;;  %p1357_p8 = pnand %p1356_p7, %p1350_p4 }
  0x5a   :  { %1010 = vmatprep.subr.bf16.mxu1 %v1243_v23  ;;  %v122_v50 = vld [vmem:[%s1605_s2] sm:$0x3] }
  0x5b   :  { %v1517_v52 = vrot.slane %v122_v50, %v126_v49  ;;  %v1519_v53 = vrot.slane %v122_v50, %v130_v51 }
  0x5c   :  { %271 = vmatpush1.bf16.msra.mxu0 %v1219_v10 }
  0x5d   :  { %272 = vmatprep.subr.bf16.mxu0 %v1220_v11  ;;  %1011 = vmatpush3.bf16.msra.mxu1 %v1244_v25 }
  0x5e   :  { %1012 = vmatprep.subr.bf16.mxu1 %v1245_v26 }
  0x60   :  { %273 = vmatpush1.bf16.msra.mxu0 %v1222_v12 }
  0x61   :  { %274 = vmatprep.subr.bf16.mxu0 %v1223_v13  ;;  %1013 = vmatpush3.bf16.msra.mxu1 %v1246_v27 }
  0x62   :  { %1014 = vmatprep.subr.bf16.mxu1 %v1247_v28 }
  0x64   :  { %275 = vmatpush1.bf16.msra.mxu0 %v1225_v16 }
  0x65   :  { %276 = vmatprep.subr.bf16.mxu0 %v1226_v20  ;;  %1015 = vmatpush3.bf16.msra.mxu1 %v1248_v36 }
  0x66   :  { %1016 = vmatprep.subr.bf16.mxu1 %v1249_v37 }
  0x68   :  { %277 = vmatpush1.bf16.msra.mxu0 %v1228_v21 }
  0x69   :  { %1017 = vmatpush3.bf16.msra.mxu1 %v1250_v38  ;;  %1101 = vmatprep.subr.bf16.mxu0 %v1253_v41 }
  0x6a   :  { %1018 = vmatprep.subr.bf16.mxu1 %v1251_v39 }
  0x6b   :  { %295 = vmatmul.mubr.bf16.vlgmr.msra.gmra.mrb[0].mxu0 %v1229_v24 }
  0x6c   :  { %304 = vmatprep.mubr.bf16.mxu0 %v1387_v0  ;;  %1102 = vmatpush3.bf16.msra.mxu0 %v1253_v41 }
  0x6d   :  { %1019 = vmatpush3.bf16.msra.mxu1 %v1252_v40  ;;  %1103 = vmatprep.subr.bf16.mxu0 %v1254_v42 }
  0x70   :  { %1104 = vmatpush3.bf16.msra.mxu0 %v1254_v42 }
  0x71   :  { %1105 = vmatprep.subr.bf16.mxu0 %v1255_v43 }
  0x73   :  { %305 = vmatmul.mubr.bf16.gmra.mrb[4].mxu0 %v1230_v29 }
  0x74   :  { %314 = vmatprep.mubr.bf16.mxu0 %v1387_v0  ;;  %1106 = vmatpush3.bf16.msra.mxu0 %v1255_v43 }
  0x75   :  { %1107 = vmatprep.subr.bf16.mxu0 %v1256_v44 }
  0x78   :  { %1108 = vmatpush3.bf16.msra.mxu0 %v1256_v44 }
  0x79   :  { %1109 = vmatprep.subr.bf16.mxu0 %v1257_v45 }
  0x7b   :  { %315 = vmatmul.mubr.bf16.gmra.mrb[8].mxu0 %v1231_v30 }
  0x7c   :  { %324 = vmatprep.mubr.bf16.mxu0 %v1387_v0  ;;  %1110 = vmatpush3.bf16.msra.mxu0 %v1257_v45 }
  0x7d   :  { %1111 = vmatprep.subr.bf16.mxu0 %v1258_v46 }
  0x80   :  { %1112 = vmatpush3.bf16.msra.mxu0 %v1258_v46 }
  0x83   :  { %325 = vmatmul.mubr.bf16.gmra.mrb[12].mxu0 %v1232_v31 }
  0x84   :  { %334 = vmatprep.mubr.bf16.mxu0 %v1387_v0 }
  0x8b   :  { %335 = vmatmul.mubr.bf16.gmra.mrb[16].mxu0 %v1233_v32 }
  0x8c   :  { %344 = vmatprep.mubr.bf16.mxu0 %v1387_v0 }
  0x93   :  { %345 = vmatmul.mubr.bf16.gmra.mrb[20].mxu0 %v1234_v33 }
  0x94   :  { %354 = vmatprep.mubr.bf16.mxu0 %v1387_v0 }
  0x9b   :  { %355 = vmatmul.mubr.bf16.gmra.mrb[24].mxu0 %v1235_v34 }
  0x9c   :  { %364 = vmatprep.mubr.bf16.mxu0 %v1387_v0 }
  0xa3   :  { %365 = vmatmul.mubr.bf16.gmra.mrb[28].mxu0 %v1236_v35 }
 0x13e   :  { %v296_v54 = vpop.f32.mrb[0].mxu0 }
 0x13f   :  { %v297_v55 = vadd.f32 %v296_v54, %v1517_v52  ;;  %v298_v56 = vpop.f32.mrb[1].mxu0 }
 0x140   :  { %v299_v57 = vadd.f32 %v298_v56, %v1519_v53  ;;  %v300_v58 = vpop.f32.mrb[2].mxu0 }
 0x141   :  { %v301_v59 = vadd.f32 %v300_v58, %v1517_v52  ;;  %v302_v60 = vpop.f32.mrb[3].mxu0  ;;  %v375_v62 = vmax.f32 %v297_v55, 0.0 }
 0x142   :  { %v303_v61 = vadd.f32 %v302_v60, %v1519_v53  ;;  %v376_v0 = vmax.f32 %v299_v57, 0.0 }
 0x143   :  { %v377_v63 = vmax.f32 %v301_v59, 0.0 }
 0x144   :  { %v378_v1 = vmax.f32 %v303_v61, 0.0 }
 0x145   :  { %v407_v2 = vpack.c.bf16 %v377_v63, %v375_v62 }
 0x146   :  { %v306_v3 = vpop.f32.mrb[4].mxu0  ;;  %v408_v4 = vpack.c.bf16 %v378_v1, %v376_v0 }
 0x147   :  { %v307_v5 = vadd.f32 %v306_v3, %v1517_v52  ;;  %v308_v6 = vpop.f32.mrb[5].mxu0 }
 0x148   :  { %v309_v7 = vadd.f32 %v308_v6, %v1519_v53  ;;  %v310_v8 = vpop.f32.mrb[6].mxu0  ;;  %590 = vmatprep.mubr.bf16.mxu1 %v408_v4 }
 0x149   :  { %v311_v9 = vadd.f32 %v310_v8, %v1517_v52  ;;  %v312_v10 = vpop.f32.mrb[7].mxu0  ;;  %591 = vmatmul.mubr.bf16.vlgmr.msra.gmra.mrb[0].mxu1 %v407_v2  ;;  %v379_v12 = vmax.f32 %v307_v5, 0.0 }
 0x14a   :  { %v313_v11 = vadd.f32 %v312_v10, %v1519_v53  ;;  %v380_v14 = vmax.f32 %v309_v7, 0.0 }
 0x14b   :  { %v381_v13 = vmax.f32 %v311_v9, 0.0 }
 0x14c   :  { %v382_v15 = vmax.f32 %v313_v11, 0.0 }
 0x14d   :  { %v409_v16 = vpack.c.bf16 %v381_v13, %v379_v12 }
 0x14e   :  { %v410_v17 = vpack.c.bf16 %v382_v15, %v380_v14  ;;  %v316_v18 = vpop.f32.mrb[8].mxu0 }
 0x14f   :  { %v317_v19 = vadd.f32 %v316_v18, %v1517_v52  ;;  %v318_v20 = vpop.f32.mrb[9].mxu0 }
 0x150   :  { %v319_v21 = vadd.f32 %v318_v20, %v1519_v53  ;;  %v320_v22 = vpop.f32.mrb[10].mxu0  ;;  %598 = vmatprep.mubr.bf16.mxu1 %v410_v17 }
 0x151   :  { %v321_v23 = vadd.f32 %v320_v22, %v1517_v52  ;;  %v322_v24 = vpop.f32.mrb[11].mxu0  ;;  %599 = vmatmul.mubr.bf16.gmra.mrb[4].mxu1 %v409_v16  ;;  %v383_v26 = vmax.f32 %v317_v19, 0.0 }
 0x152   :  { %v323_v25 = vadd.f32 %v322_v24, %v1519_v53  ;;  %v384_v28 = vmax.f32 %v319_v21, 0.0 }
 0x153   :  { %v385_v27 = vmax.f32 %v321_v23, 0.0 }
 0x154   :  { %v386_v29 = vmax.f32 %v323_v25, 0.0 }
 0x155   :  { %v411_v30 = vpack.c.bf16 %v385_v27, %v383_v26 }
 0x156   :  { %v412_v31 = vpack.c.bf16 %v386_v29, %v384_v28  ;;  %v326_v32 = vpop.f32.mrb[12].mxu0 }
 0x157   :  { %v327_v33 = vadd.f32 %v326_v32, %v1517_v52  ;;  %v328_v34 = vpop.f32.mrb[13].mxu0 }
 0x158   :  { %v329_v35 = vadd.f32 %v328_v34, %v1519_v53  ;;  %v330_v36 = vpop.f32.mrb[14].mxu0  ;;  %606 = vmatprep.mubr.bf16.mxu1 %v412_v31 }
 0x159   :  { %v331_v37 = vadd.f32 %v330_v36, %v1517_v52  ;;  %v332_v38 = vpop.f32.mrb[15].mxu0  ;;  %607 = vmatmul.mubr.bf16.gmra.mrb[8].mxu1 %v411_v30  ;;  %v387_v40 = vmax.f32 %v327_v33, 0.0 }
 0x15a   :  { %v333_v39 = vadd.f32 %v332_v38, %v1519_v53  ;;  %v388_v42 = vmax.f32 %v329_v35, 0.0 }
 0x15b   :  { %v389_v41 = vmax.f32 %v331_v37, 0.0 }
 0x15c   :  { %v390_v43 = vmax.f32 %v333_v39, 0.0 }
 0x15d   :  { %v413_v44 = vpack.c.bf16 %v389_v41, %v387_v40  ;;  %v1259_v40 = vld [vmem:[#allocation9 + $0x30] sm:$0xff]   ;;  %v1260_v41 = vld [vmem:[#allocation9 + $0x38] sm:$0xff]  }
 0x15e   :  { %v414_v45 = vpack.c.bf16 %v390_v43, %v388_v42  ;;  %v336_v46 = vpop.f32.mrb[16].mxu0  ;;  %1113 = vmatprep.subr.bf16.mxu0 %v1259_v40 }
 0x15f   :  { %v337_v47 = vadd.f32 %v336_v46, %v1517_v52  ;;  %v338_v48 = vpop.f32.mrb[17].mxu0  ;;  %1114 = vmatpush3.bf16.msra.mxu0 %v1259_v40 }
 0x160   :  { %v339_v49 = vadd.f32 %v338_v48, %v1519_v53  ;;  %v340_v50 = vpop.f32.mrb[18].mxu0  ;;  %614 = vmatprep.mubr.bf16.mxu1 %v414_v45  ;;  %1115 = vmatprep.subr.bf16.mxu0 %v1260_v41 }
 0x161   :  { %v341_v51 = vadd.f32 %v340_v50, %v1517_v52  ;;  %v342_v54 = vpop.f32.mrb[19].mxu0  ;;  %615 = vmatmul.mubr.bf16.gmra.mrb[12].mxu1 %v413_v44  ;;  %v391_v56 = vmax.f32 %v337_v47, 0.0 }
 0x162   :  { %v343_v55 = vadd.f32 %v342_v54, %v1519_v53  ;;  %v392_v58 = vmax.f32 %v339_v49, 0.0 }
 0x163   :  { %v393_v57 = vmax.f32 %v341_v51, 0.0  ;;  %1116 = vmatpush3.bf16.msra.mxu0 %v1260_v41 }
 0x164   :  { %v394_v59 = vmax.f32 %v343_v55, 0.0 }
 0x165   :  { %v415_v60 = vpack.c.bf16 %v393_v57, %v391_v56 }
 0x166   :  { %v416_v61 = vpack.c.bf16 %v394_v59, %v392_v58  ;;  %v346_v62 = vpop.f32.mrb[20].mxu0 }
 0x167   :  { %v347_v63 = vadd.f32 %v346_v62, %v1517_v52  ;;  %v348_v0 = vpop.f32.mrb[21].mxu0 }
 0x168   :  { %v349_v1 = vadd.f32 %v348_v0, %v1519_v53  ;;  %v350_v2 = vpop.f32.mrb[22].mxu0  ;;  %622 = vmatprep.mubr.bf16.mxu1 %v416_v61 }
 0x169   :  { %v351_v3 = vadd.f32 %v350_v2, %v1517_v52  ;;  %v352_v4 = vpop.f32.mrb[23].mxu0  ;;  %623 = vmatmul.mubr.bf16.gmra.mrb[16].mxu1 %v415_v60  ;;  %v395_v6 = vmax.f32 %v347_v63, 0.0 }
 0x16a   :  { %v353_v5 = vadd.f32 %v352_v4, %v1519_v53  ;;  %v396_v8 = vmax.f32 %v349_v1, 0.0 }
 0x16b   :  { %v397_v7 = vmax.f32 %v351_v3, 0.0 }
 0x16c   :  { %v398_v9 = vmax.f32 %v353_v5, 0.0 }
 0x16d   :  { %v417_v10 = vpack.c.bf16 %v397_v7, %v395_v6 }
 0x16e   :  { %v418_v11 = vpack.c.bf16 %v398_v9, %v396_v8  ;;  %v356_v12 = vpop.f32.mrb[24].mxu0 }
 0x16f   :  { %v357_v13 = vadd.f32 %v356_v12, %v1517_v52  ;;  %v358_v14 = vpop.f32.mrb[25].mxu0 }
 0x170   :  { %v359_v15 = vadd.f32 %v358_v14, %v1519_v53  ;;  %v360_v16 = vpop.f32.mrb[26].mxu0  ;;  %630 = vmatprep.mubr.bf16.mxu1 %v418_v11 }
 0x171   :  { %v361_v17 = vadd.f32 %v360_v16, %v1517_v52  ;;  %v362_v18 = vpop.f32.mrb[27].mxu0  ;;  %631 = vmatmul.mubr.bf16.gmra.mrb[20].mxu1 %v417_v10  ;;  %v399_v20 = vmax.f32 %v357_v13, 0.0 }
 0x172   :  { %v363_v19 = vadd.f32 %v362_v18, %v1519_v53  ;;  %v400_v22 = vmax.f32 %v359_v15, 0.0 }
 0x173   :  { %v401_v21 = vmax.f32 %v361_v17, 0.0 }
 0x174   :  { %v402_v23 = vmax.f32 %v363_v19, 0.0 }
 0x175   :  { %v419_v24 = vpack.c.bf16 %v401_v21, %v399_v20 }
 0x176   :  { %v420_v25 = vpack.c.bf16 %v402_v23, %v400_v22  ;;  %v366_v26 = vpop.f32.mrb[28].mxu0 }
 0x177   :  { %v367_v27 = vadd.f32 %v366_v26, %v1517_v52  ;;  %v368_v28 = vpop.f32.mrb[29].mxu0 }
 0x178   :  { %v369_v29 = vadd.f32 %v368_v28, %v1519_v53  ;;  %v370_v30 = vpop.f32.mrb[30].mxu0  ;;  %638 = vmatprep.mubr.bf16.mxu1 %v420_v25 }
 0x179   :  { %v371_v31 = vadd.f32 %v370_v30, %v1517_v52  ;;  %v372_v32 = vpop.f32.mrb[31].mxu0  ;;  %639 = vmatmul.mubr.bf16.gmra.mrb[24].mxu1 %v419_v24  ;;  %v403_v34 = vmax.f32 %v367_v27, 0.0  ;;  %v1556_v52 = vld [vmem:[%s1607_s4] ss:$0 sm:$0xff] }
 0x17a   :  { %v373_v33 = vadd.f32 %v372_v32, %v1519_v53  ;;  %v404_v36 = vmax.f32 %v369_v29, 0.0 }
 0x17b   :  { %v405_v35 = vmax.f32 %v371_v31, 0.0 }
 0x17c   :  { %v406_v37 = vmax.f32 %v373_v33, 0.0 }
 0x17d   :  { %v421_v38 = vpack.c.bf16 %v405_v35, %v403_v34 }
 0x17e   :  { %v422_v39 = vpack.c.bf16 %v406_v37, %v404_v36 }
 0x180   :  { %646 = vmatprep.mubr.bf16.mxu1 %v422_v39 }
 0x181   :  { %647 = vmatmul.mubr.bf16.gmra.mrb[28].mxu1 %v421_v38 }
 0x21c   :  { %v1020_v42 = vpop.f32.mrb[0].mxu1 }
 0x21d   :  { %v1021_v53 = vpop.f32.mrb[1].mxu1 }
 0x21e   :  { %v1022_v43 = vadd.f32 %v1021_v53, %v1020_v42  ;;  %v1023_v44 = vpop.f32.mrb[2].mxu1 }
 0x21f   :  { %v1024_v45 = vpop.f32.mrb[3].mxu1 }
 0x220   :  { %v593_v46 = vadd.f32 %v1022_v43, %v1556_v52  ;;  %v1025_v47 = vadd.f32 %v1024_v45, %v1023_v44 }
 0x222   :  { %v596_v48 = vadd.f32 %v1025_v47, %v1556_v52  ;;  %v655_v49 = vmax.f32 %v593_v46, 0.0 }
 0x224   :  { %v656_v50 = vmax.f32 %v596_v48, 0.0  ;;  %v1026_v51 = vpop.f32.mrb[4].mxu1 }
 0x225   :  { %v1027_v54 = vpop.f32.mrb[5].mxu1 }
 0x226   :  { %v1028_v55 = vadd.f32 %v1027_v54, %v1026_v51  ;;  %v1029_v56 = vpop.f32.mrb[6].mxu1  ;;  %v671_v57 = vpack.c.bf16 %v656_v50, %v655_v49 }
 0x227   :  { %v1030_v58 = vpop.f32.mrb[7].mxu1 }
 0x228   :  { %v601_v59 = vadd.f32 %v1028_v55, %v1556_v52  ;;  %v1031_v60 = vadd.f32 %v1030_v58, %v1029_v56  ;;  %1117 = vmatprep.mubr.bf16.mxu0 %v671_v57 }
 0x22a   :  { %v604_v61 = vadd.f32 %v1031_v60, %v1556_v52  ;;  %v657_v62 = vmax.f32 %v601_v59, 0.0 }
 0x22c   :  { %v658_v63 = vmax.f32 %v604_v61, 0.0  ;;  %v1032_v0 = vpop.f32.mrb[8].mxu1 }
 0x22d   :  { %v1033_v1 = vpop.f32.mrb[9].mxu1 }
 0x22e   :  { %v672_v2 = vpack.c.bf16 %v658_v63, %v657_v62  ;;  %v1034_v3 = vadd.f32 %v1033_v1, %v1032_v0  ;;  %v1035_v4 = vpop.f32.mrb[10].mxu1 }
 0x22f   :  { %v1036_v5 = vpop.f32.mrb[11].mxu1 }
 0x230   :  { %v609_v6 = vadd.f32 %v1034_v3, %v1556_v52  ;;  %v1037_v7 = vadd.f32 %v1036_v5, %v1035_v4  ;;  %1118 = vmatmul.mubr.bf16.vlgmr.msra.gmra.mrb[32].mxu0 %v672_v2  ;;  %v1388_v4 = vmov 0.0|0.0   ;;  %v1390_v5 = vmov 0.0  }
 0x231   :  { %1168 = vmatprep.subr.bf16.mxu1 %v1388_v4  ;;  %1165 = vmatprep.mubr.msk.f32.mxu1 %vm1389_vm0, %v1390_v5 }
 0x232   :  { %v612_v8 = vadd.f32 %v1037_v7, %v1556_v52  ;;  %v659_v9 = vmax.f32 %v609_v6, 0.0  ;;  %v995_v6 = vld [vmem:[%s1609_s6] ss:$0 sm:$0xff] }
 0x234   :  { %v660_v10 = vmax.f32 %v612_v8, 0.0  ;;  %v1038_v11 = vpop.f32.mrb[12].mxu1 }
 0x235   :  { %v1039_v12 = vpop.f32.mrb[13].mxu1 }
 0x236   :  { %v1040_v13 = vadd.f32 %v1039_v12, %v1038_v11  ;;  %v1041_v14 = vpop.f32.mrb[14].mxu1  ;;  %v673_v15 = vpack.c.bf16 %v660_v10, %v659_v9 }
 0x237   :  { %v1042_v16 = vpop.f32.mrb[15].mxu1 }
 0x238   :  { %v617_v17 = vadd.f32 %v1040_v13, %v1556_v52  ;;  %v1043_v18 = vadd.f32 %v1042_v16, %v1041_v14  ;;  %1121 = vmatprep.mubr.bf16.mxu0 %v673_v15 }
 0x23a   :  { %v620_v19 = vadd.f32 %v1043_v18, %v1556_v52  ;;  %v661_v20 = vmax.f32 %v617_v17, 0.0 }
 0x23c   :  { %v662_v21 = vmax.f32 %v620_v19, 0.0  ;;  %v1044_v22 = vpop.f32.mrb[16].mxu1 }
 0x23d   :  { %v1045_v23 = vpop.f32.mrb[17].mxu1 }
 0x23e   :  { %v1046_v24 = vadd.f32 %v1045_v23, %v1044_v22  ;;  %v1047_v25 = vpop.f32.mrb[18].mxu1  ;;  %v674_v26 = vpack.c.bf16 %v662_v21, %v661_v20 }
 0x23f   :  { %v1048_v27 = vpop.f32.mrb[19].mxu1 }
 0x240   :  { %v625_v28 = vadd.f32 %v1046_v24, %v1556_v52  ;;  %v1049_v29 = vadd.f32 %v1048_v27, %v1047_v25  ;;  %1122 = vmatmul.mubr.bf16.gmra.mrb[36].mxu0 %v674_v26 }
 0x242   :  { %v628_v30 = vadd.f32 %v1049_v29, %v1556_v52  ;;  %v663_v31 = vmax.f32 %v625_v28, 0.0 }
 0x244   :  { %v664_v32 = vmax.f32 %v628_v30, 0.0  ;;  %v1050_v33 = vpop.f32.mrb[20].mxu1 }
 0x245   :  { %v1051_v34 = vpop.f32.mrb[21].mxu1 }
 0x246   :  { %v1052_v35 = vadd.f32 %v1051_v34, %v1050_v33  ;;  %v1053_v36 = vpop.f32.mrb[22].mxu1  ;;  %v675_v37 = vpack.c.bf16 %v664_v32, %v663_v31 }
 0x247   :  { %v1054_v38 = vpop.f32.mrb[23].mxu1 }
 0x248   :  { %v633_v39 = vadd.f32 %v1052_v35, %v1556_v52  ;;  %v1055_v40 = vadd.f32 %v1054_v38, %v1053_v36  ;;  %1125 = vmatprep.mubr.bf16.mxu0 %v675_v37 }
 0x24a   :  { %v636_v41 = vadd.f32 %v1055_v40, %v1556_v52  ;;  %v665_v42 = vmax.f32 %v633_v39, 0.0 }
 0x24c   :  { %v666_v53 = vmax.f32 %v636_v41, 0.0  ;;  %v1056_v43 = vpop.f32.mrb[24].mxu1 }
 0x24d   :  { %v1057_v44 = vpop.f32.mrb[25].mxu1 }
 0x24e   :  { %v1058_v45 = vadd.f32 %v1057_v44, %v1056_v43  ;;  %v1059_v46 = vpop.f32.mrb[26].mxu1  ;;  %v676_v47 = vpack.c.bf16 %v666_v53, %v665_v42 }
 0x24f   :  { %v1060_v48 = vpop.f32.mrb[27].mxu1 }
 0x250   :  { %v641_v49 = vadd.f32 %v1058_v45, %v1556_v52  ;;  %v1061_v50 = vadd.f32 %v1060_v48, %v1059_v46  ;;  %1126 = vmatmul.mubr.bf16.gmra.mrb[40].mxu0 %v676_v47 }
 0x252   :  { %v644_v51 = vadd.f32 %v1061_v50, %v1556_v52  ;;  %v667_v54 = vmax.f32 %v641_v49, 0.0 }
 0x254   :  { %v668_v55 = vmax.f32 %v644_v51, 0.0  ;;  %v1062_v56 = vpop.f32.mrb[28].mxu1 }
 0x255   :  { %v1063_v57 = vpop.f32.mrb[29].mxu1 }
 0x256   :  { %v1064_v58 = vadd.f32 %v1063_v57, %v1062_v56  ;;  %v1065_v59 = vpop.f32.mrb[30].mxu1  ;;  %v677_v60 = vpack.c.bf16 %v668_v55, %v667_v54 }
 0x257   :  { %v1066_v61 = vpop.f32.mrb[31].mxu1 }
 0x258   :  { %v649_v62 = vadd.f32 %v1064_v58, %v1556_v52  ;;  %v1067_v63 = vadd.f32 %v1066_v61, %v1065_v59  ;;  %1129 = vmatprep.mubr.bf16.mxu0 %v677_v60 }
 0x25a   :  { %v652_v0 = vadd.f32 %v1067_v63, %v1556_v52  ;;  %v669_v1 = vmax.f32 %v649_v62, 0.0  ;;  %v863_v63 = vld [vmem:[%s1610_s7] sm:$0x1] }
 0x25c   :  { %v670_v2 = vmax.f32 %v652_v0, 0.0  ;;  %v865_v0 = vstv %s1611_s8 }
 0x25e   :  { %v678_v3 = vpack.c.bf16 %v670_v2, %v669_v1 }
 0x260   :  { %1130 = vmatmul.mubr.bf16.gmra.mrb[44].mxu0 %v678_v3 }
 0x303   :  { %v1119_v7 = vpop.f32.mrb[32].mxu0 }
 0x304   :  { %v793_v8 = vadd.f32 %v1119_v7, %v995_v6  ;;  %v784_v9 = vpop.f32.mrb[33].mxu0 }
 0x305   :  { %v785_v10 = vadd.f32 %v995_v6, %v784_v9  ;;  %v1120_v11 = vpop.f32.mrb[34].mxu0 }
 0x306   :  { %v796_v52 = vadd.f32 %v1120_v11, %v995_v6  ;;  %v787_v12 = vpop.f32.mrb[35].mxu0  ;;  %v849_v14 = vmax.f32 %v793_v8, 0.0 }
 0x307   :  { %v788_v13 = vadd.f32 %v995_v6, %v787_v12  ;;  %v847_v16 = vmax.f32 %v785_v10, 0.0 }
 0x308   :  { %v850_v15 = vmax.f32 %v796_v52, 0.0 }
 0x309   :  { %v848_v17 = vmax.f32 %v788_v13, 0.0 }
 0x30a   :  { %v1172_v18 = vpack.c.bf16 %v850_v15, %v849_v14 }
 0x30b   :  { %v1169_v19 = vpack.c.bf16 %v848_v17, %v847_v16 }
 0x30d   :  { %1170 = vmatpush3.bf16.xpose.msra.mxu1 %v1169_v19 }
 0x30e   :  { %1171 = vmatprep.subr.bf16.mxu1 %v1388_v4 }
 0x313   :  { %v1123_v20 = vpop.f32.mrb[36].mxu0 }
 0x314   :  { %v809_v21 = vadd.f32 %v1123_v20, %v995_v6  ;;  %v800_v22 = vpop.f32.mrb[37].mxu0 }
 0x315   :  { %v801_v23 = vadd.f32 %v995_v6, %v800_v22  ;;  %v1124_v24 = vpop.f32.mrb[38].mxu0  ;;  %1173 = vmatpush3.bf16.xpose.msra.mxu1 %v1172_v18 }
 0x316   :  { %v812_v25 = vadd.f32 %v1124_v24, %v995_v6  ;;  %v803_v26 = vpop.f32.mrb[39].mxu0  ;;  %1174 = vmatprep.subr.bf16.mxu1 %v1388_v4  ;;  %v853_v28 = vmax.f32 %v809_v21, 0.0 }
 0x317   :  { %v804_v27 = vadd.f32 %v995_v6, %v803_v26  ;;  %v851_v30 = vmax.f32 %v801_v23, 0.0 }
 0x318   :  { %v854_v29 = vmax.f32 %v812_v25, 0.0 }
 0x319   :  { %v852_v31 = vmax.f32 %v804_v27, 0.0 }
 0x31a   :  { %v1178_v32 = vpack.c.bf16 %v854_v29, %v853_v28 }
 0x31b   :  { %v1175_v33 = vpack.c.bf16 %v852_v31, %v851_v30 }
 0x31d   :  { %1176 = vmatpush3.bf16.xpose.msra.mxu1 %v1175_v33 }
 0x31e   :  { %1177 = vmatprep.subr.bf16.mxu1 %v1388_v4 }
 0x323   :  { %v1127_v34 = vpop.f32.mrb[40].mxu0 }
 0x324   :  { %v825_v35 = vadd.f32 %v1127_v34, %v995_v6  ;;  %v816_v36 = vpop.f32.mrb[41].mxu0 }
 0x325   :  { %v817_v37 = vadd.f32 %v995_v6, %v816_v36  ;;  %v1128_v38 = vpop.f32.mrb[42].mxu0  ;;  %1179 = vmatpush3.bf16.xpose.msra.mxu1 %v1178_v32 }
 0x326   :  { %v828_v39 = vadd.f32 %v1128_v38, %v995_v6  ;;  %v819_v40 = vpop.f32.mrb[43].mxu0  ;;  %1180 = vmatprep.subr.bf16.mxu1 %v1388_v4  ;;  %v857_v42 = vmax.f32 %v825_v35, 0.0 }
 0x327   :  { %v820_v41 = vadd.f32 %v995_v6, %v819_v40  ;;  %v855_v43 = vmax.f32 %v817_v37, 0.0 }
 0x328   :  { %v858_v53 = vmax.f32 %v828_v39, 0.0 }
 0x329   :  { %v856_v44 = vmax.f32 %v820_v41, 0.0 }
 0x32a   :  { %v1184_v45 = vpack.c.bf16 %v858_v53, %v857_v42 }
 0x32b   :  { %v1181_v46 = vpack.c.bf16 %v856_v44, %v855_v43 }
 0x32d   :  { %1182 = vmatpush3.bf16.xpose.msra.mxu1 %v1181_v46 }
 0x32e   :  { %1183 = vmatprep.subr.bf16.mxu1 %v1388_v4 }
 0x333   :  { %v1131_v47 = vpop.f32.mrb[44].mxu0 }
 0x334   :  { %v841_v48 = vadd.f32 %v1131_v47, %v995_v6  ;;  %v832_v49 = vpop.f32.mrb[45].mxu0 }
 0x335   :  { %v833_v50 = vadd.f32 %v995_v6, %v832_v49  ;;  %v1132_v51 = vpop.f32.mrb[46].mxu0  ;;  %1185 = vmatpush3.bf16.xpose.msra.mxu1 %v1184_v45 }
 0x336   :  { %v844_v54 = vadd.f32 %v1132_v51, %v995_v6  ;;  %v835_v55 = vpop.f32.mrb[47].mxu0  ;;  %1186 = vmatprep.subr.bf16.mxu1 %v1388_v4  ;;  %v861_v57 = vmax.f32 %v841_v48, 0.0 }
 0x337   :  { %v836_v56 = vadd.f32 %v995_v6, %v835_v55  ;;  %v859_v59 = vmax.f32 %v833_v50, 0.0 }
 0x338   :  { %v862_v58 = vmax.f32 %v844_v54, 0.0 }
 0x339   :  { %v860_v60 = vmax.f32 %v836_v56, 0.0 }
 0x33a   :  { %v1190_v61 = vpack.c.bf16 %v862_v58, %v861_v57 }
 0x33b   :  { %v1187_v62 = vpack.c.bf16 %v860_v60, %v859_v59 }
 0x33d   :  { %1188 = vmatpush3.bf16.xpose.msra.mxu1 %v1187_v62 }
 0x33e   :  { %1189 = vmatprep.subr.bf16.mxu1 %v1388_v4 }
 0x345   :  { %1191 = vmatpush3.bf16.xpose.msra.mxu1 %v1190_v61 }
 0x34c   :  { %1166 = vmatmul.mubr.f32.vlgmr.msra.gmra.mrb[32].mxu1 %v863_v63 }
 0x41f   :  { %v932_v1 = vpop.f32.mrb[32].mxu1 }
 0x420   :  { %v933_v2 = vadd.f32 %v932_v1, %v865_v0  ;;  %v1167_v3 = vpop.f32.mrb[33].mxu1 }
 0x422   :  { %936 = vst [vmem:[#allocation11] sm:$0x1] %v933_v2 }
 0x423   :  { %1360 = shalt.err (!%p1357_p8)
}
 0x424   :  { %s1361_s0 = scalar_lea.hbm %s1612_s9, 16 }
 0x425   :  { %p1362_p9 = scmp.ne.s32.totalorder %s1612_s9, %s1361_s0  ;;  %p1365_p10 = scmp.lt.u32.totalorder %s1361_s0, %s1612_s9 }
 0x427   :  { %p1367_p11 = pnand %p1365_p10, %p1362_p9 }
 0x429   :  { %1370 = shalt.err (!%p1367_p11)
}
 0x42a   :  { %946 = dma.vmem_to_hbm [thread:$0]  %s944_s22, 16, %s1612_s9, [#allocation5]  }
 0x42b   :  { %1377 = dma.done.wait [#allocation5], 16  }
 0x42c   :  { %1378 = vsyncadd [#allocation5], 4294967280 }
 0x42d   :  { %950 = vsyncpa [#allocation4], 1 }
 0x42e   :  { %951 = vsyncpa [#allocation7], 1 }
 0x42f   :  { %952 = vsyncpa [#allocation10], 1 }
 0x430   :  { %953 = vsyncpa [#allocation5], 1 }

</bundles_post_ra>
